<compile_context>
chip_gen: v7x
topology: tpu7x:2x2x1
jax: 0.10.0
libtpu: 0.0.40
codegen_flags: <defaults>
</compile_context>

<pallas_src>
import jax
import jax.numpy as jnp
from jax.experimental import pallas as pl
from jax.experimental.pallas import tpu as pltpu


def _biasfree_layernorm_kernel(x_ref, w_ref, o_ref):
    # x_ref: (tile_rows, C)   w_ref: (1, C)   o_ref: (tile_rows, C)
    x = x_ref[...].astype(jnp.float32)
    c = x.shape[-1]
    inv_c = jnp.float32(1.0 / c)

    # Single-pass stats: mu = E[x], var = E[x^2] - mu^2  (unbiased=False).
    s1 = jnp.sum(x, axis=-1, keepdims=True)
    s2 = jnp.sum(x * x, axis=-1, keepdims=True)
    mu = s1 * inv_c
    var = s2 * inv_c - mu * mu

    inv = jax.lax.rsqrt(var + jnp.float32(1e-5))
    w = w_ref[...].astype(jnp.float32)
    o_ref[...] = (x * inv * w).astype(o_ref.dtype)


def _pick_tile_rows(rows, C, itemsize):
    """Pick the largest row tile s.t. one (tile_rows, C) block is ~4 MiB.

    With double-buffered input + output blocks plus f32 intermediates this
    stays well under the 64 MiB VMEM of a v7x TensorCore (and the 128 MiB of
    v5e/v6e), while being big enough to hide per-grid-step overhead.
    """
    target_block_bytes = 4 * 1024 * 1024
    t = target_block_bytes // max(1, C * itemsize)
    t = max(8, min(1024, int(t)))
    t = (t // 8) * 8  # multiple of 8 sublanes (block-shape constraint)
    if t >= rows:
        return rows  # one block spanning the full row dim is always legal
    return max(8, t)


def biasfree_layernorm(x, weight, *, tile_rows=None):
    """x: (..., C), weight: (C,). Returns same shape/dtype as x."""
    orig_shape = x.shape
    C = orig_shape[-1]
    rows = 1
    for d in orig_shape[:-1]:
        rows *= d
    x2 = x.reshape(rows, C)
    w2 = weight.reshape(1, C)

    itemsize = jnp.dtype(x.dtype).itemsize
    if tile_rows is None:
        tile_rows = _pick_tile_rows(rows, C, itemsize)
    tile_rows = min(tile_rows, rows)

    # No padding copy: ragged last block handled by Pallas block clipping.
    grid = (pl.cdiv(rows, tile_rows),)

    # VMEM budget: 2x double-buffered blocks (in + out) + f32 intermediates
    # of one tile + slack. Clamped to 64 MiB (v7x physical VMEM per TC).
    block_bytes = tile_rows * C * itemsize
    f32_bytes = tile_rows * C * 4
    vmem_limit = int(min(4 * block_bytes + 3 * f32_bytes + (4 << 20), 64 << 20))
    vmem_limit = max(vmem_limit, 16 << 20)

    cost = pl.CostEstimate(
        flops=6 * rows * C,
        transcendentals=rows,
        bytes_accessed=2 * rows * C * itemsize + C * itemsize,
    )

    # TODO(synk): for very large C (row > a few MiB) add a second "arbitrary"
    # grid axis over C with s1/s2 accumulated in SMEM/VMEM scratch; for C not
    # a multiple of 128 a lane-dense (padded-C) output layout can further
    # speed up writeback.
    out = pl.pallas_call(
        _biasfree_layernorm_kernel,
        out_shape=jax.ShapeDtypeStruct((rows, C), x.dtype),
        grid_spec=pltpu.PrefetchScalarGridSpec(
            num_scalar_prefetch=0,
            grid=grid,
            in_specs=[
                pl.BlockSpec((tile_rows, C), lambda i: (i, 0)),
                pl.BlockSpec((1, C), lambda i: (0, 0)),
            ],
            out_specs=pl.BlockSpec((tile_rows, C), lambda i: (i, 0)),
        ),
        compiler_params=pltpu.CompilerParams(
            dimension_semantics=("parallel",),
            vmem_limit_bytes=vmem_limit,
        ),
        cost_estimate=cost,
    )(x2, w2)

    return out.reshape(orig_shape)


def _ref_biasfree_layernorm(x, weight):
    mu = jnp.mean(x, axis=-1, keepdims=True)
    var = jnp.mean((x - mu) ** 2, axis=-1, keepdims=True)
    return x / jnp.sqrt(var + 1e-5) * weight


if __name__ == "__main__":
    key = jax.random.PRNGKey(0)

    # Tokens from a (B=2, H=4, W=4, C=32) feature map -> (B, HW, C)
    B, HW, C = 2, 16, 32
    x = jax.random.normal(key, (B, HW, C), dtype=jnp.float32)
    weight = jnp.ones((C,), dtype=jnp.float32)  # nn.Parameter(torch.ones(C))

    out = biasfree_layernorm(x, weight)
    jax.block_until_ready(out)

    ref = _ref_biasfree_layernorm(x, weight)
    assert out.shape == x.shape and out.dtype == x.dtype
    assert jnp.max(jnp.abs(out - ref)) < 1e-4

    # Exercise the ragged-last-block path (rows=20, tile_rows=8 -> grid=3,
    # last block half out of bounds) and a non-trivial weight.
    x2 = jax.random.normal(jax.random.PRNGKey(1), (20, 48), dtype=jnp.float32)
    w2 = 0.5 + jnp.arange(48, dtype=jnp.float32) / 48.0
    out2 = biasfree_layernorm(x2, w2, tile_rows=8)
    jax.block_until_ready(out2)
    ref2 = _ref_biasfree_layernorm(x2, w2)
    assert jnp.max(jnp.abs(out2 - ref2)) < 1e-4

    print("KERNEL_OK")
</pallas_src>

<mosaic_0001>
module attributes {stable_mosaic.version = 11 : i64} {
  func.func @_biasfree_layernorm_kernel(%arg0: i32, %arg1: memref<32x32xf32, #tpu.memory_space<vmem>>, %arg2: memref<1x32xf32, #tpu.memory_space<vmem>>, %arg3: memref<32x32xf32, #tpu.memory_space<vmem>>) attributes {dimension_semantics = [#tpu.dimension_semantics<parallel>], iteration_bounds = array<i64: 1>, scalar_prefetch = 0 : i64, scratch_operands = 0 : i64, tpu.core_type = #tpu.core_type<tc>, window_params = [{transform_indices = @transform_0, window_bounds = array<i64: 32, 32>}, {pipeline_mode = #tpu.pipeline_mode<synchronous>, transform_indices = @transform_1, window_bounds = array<i64: 1, 32>}, {transform_indices = @transform_2, window_bounds = array<i64: 32, 32>}]} {
    %c0 = arith.constant 0 : index
    %c0_0 = arith.constant 0 : index
    %0 = vector.load %arg1[%c0, %c0_0] : memref<32x32xf32, #tpu.memory_space<vmem>>, vector<32x32xf32>
    %cst = arith.constant dense<0.000000e+00> : vector<32xf32>
    %1 = vector.multi_reduction <add>, %0, %cst [1] : vector<32x32xf32> to vector<32xf32>
    %2 = vector.shape_cast %1 : vector<32xf32> to vector<32x1xf32>
    %3 = arith.mulf %0, %0 : vector<32x32xf32>
    %cst_1 = arith.constant dense<0.000000e+00> : vector<32xf32>
    %4 = vector.multi_reduction <add>, %3, %cst_1 [1] : vector<32x32xf32> to vector<32xf32>
    %5 = vector.shape_cast %4 : vector<32xf32> to vector<32x1xf32>
    %cst_2 = arith.constant 3.125000e-02 : f32
    %6 = vector.broadcast %cst_2 : f32 to vector<32x1xf32>
    %7 = arith.mulf %2, %6 : vector<32x1xf32>
    %cst_3 = arith.constant 3.125000e-02 : f32
    %8 = vector.broadcast %cst_3 : f32 to vector<32x1xf32>
    %9 = arith.mulf %5, %8 : vector<32x1xf32>
    %10 = arith.mulf %7, %7 : vector<32x1xf32>
    %11 = arith.subf %9, %10 : vector<32x1xf32>
    %cst_4 = arith.constant 9.99999974E-6 : f32
    %12 = vector.broadcast %cst_4 : f32 to vector<32x1xf32>
    %13 = arith.addf %11, %12 : vector<32x1xf32>
    %14 = math.rsqrt %13 : vector<32x1xf32>
    %c0_5 = arith.constant 0 : index
    %c0_6 = arith.constant 0 : index
    %15 = vector.load %arg2[%c0_5, %c0_6] : memref<1x32xf32, #tpu.memory_space<vmem>>, vector<1x32xf32>
    %16 = vector.broadcast %14 : vector<32x1xf32> to vector<32x32xf32>
    %17 = arith.mulf %0, %16 : vector<32x32xf32>
    %18 = vector.broadcast %15 : vector<1x32xf32> to vector<32x32xf32>
    %19 = arith.mulf %17, %18 : vector<32x32xf32>
    %c0_7 = arith.constant 0 : index
    %c0_8 = arith.constant 0 : index
    %20 = vector.load %arg3[%c0_7, %c0_8] : memref<32x32xf32, #tpu.memory_space<vmem>>, vector<32x32xf32>
    tpu.vector_store %arg3[%c0_7, %c0_8], %19 {strides = array<i32>} : memref<32x32xf32, #tpu.memory_space<vmem>>, vector<32x32xf32>,
    return
  }
  func.func @transform_0(%arg0: i32) -> (i32, i32) {
    %c0_i32 = arith.constant 0 : i32
    %c0_i32_0 = arith.constant 0 : i32
    return %arg0, %c0_i32 : i32, i32
  }
  func.func @transform_1(%arg0: i32) -> (i32, i32) {
    %c0_i32 = arith.constant 0 : i32
    %c0_i32_0 = arith.constant 0 : i32
    %c0_i32_1 = arith.constant 0 : i32
    return %c0_i32, %c0_i32_0 : i32, i32
  }
  func.func @transform_2(%arg0: i32) -> (i32, i32) {
    %c0_i32 = arith.constant 0 : i32
    %c0_i32_0 = arith.constant 0 : i32
    return %arg0, %c0_i32 : i32, i32
  }
}

</mosaic_0001>

<bundles_post_ra>
// kernel: tpu_custom_call.1
= control target key start
LH: loop header
LB: loop body
LE: loop exit
PB: predicated region body
PF: predicated region fallthrough
CT: control target
= control target key end

     0   :  { %7 = vsyncpa [#allocation3], 0  ;;  %s256_s0 = inlined_call_operand.hbm [shape: f32[32,32], index: 0, kind: input, shape index: {}]   ;;  %s257_s1 = inlined_call_operand.vmem [shape: f32[1,32], index: 1, kind: input, shape index: {}]   ;;  %s258_s2 = inlined_call_operand.hbm [shape: f32[32,32], index: 2, kind: output, shape index: {}]  }
   0x1   :  { %8 = vsyncpa [#allocation4], 0  ;;  %s180_s9 = smov [#allocation2]   ;;  %s132_s13 = scalar_lea.hbm %s256_s0, 512 }
   0x2   :  { %s14_s10 = sshll.u32 %s180_s9, 4  ;;  %p133_p0 = scmp.ne.s32.totalorder %s256_s0, %s132_s13  ;;  %s15_s10 = int_to_ptr.vmem [resolvable:$true] %s14_s10 }
   0x3   :  { %p136_p1 = scmp.lt.u32.totalorder %s132_s13, %s256_s0 }
   0x5   :  { %p138_p2 = pnand %p136_p1, %p133_p0 }
   0x7   :  { %141 = shalt.err (!%p138_p2)
}
   0x8   :  { %s142_s18 = scalar_lea.vmem %s15_s10, 512  ;;  %p147_p4 = scmp.lt.s32.totalorder %s15_s10, %s15_s10 }
   0x9   :  { %p143_p3 = scmp.ne.s32.totalorder %s15_s10, %s142_s18  ;;  %p148_p5 = scmp.lt.s32.totalorder %s142_s18, %s142_s18 }
   0xb   :  { %p149_p6 = por %p148_p5, %p147_p4 }
   0xd   :  { %p150_p7 = pnand %p149_p6, %p143_p3 }
   0xf   :  { %153 = shalt.err (!%p150_p7)
}
  0x10   :  { %s181_s19 = smov 128   ;;  %s182_s20 = smov 8  }
  0x11   :  { %20 = dma.hbm_to_vmem [thread:$0]  %s256_s0, 512, %s15_s10, [#allocation3], %s181_s19, %s181_s19, %s182_s20  }
  0x12   :  { %176 = dma.done.wait [#allocation3], 512  }
  0x13   :  { %177 = vsyncadd [#allocation3], 4294966784  ;;  %vm30_vm0 = vcmask 261120   ;;  %v214_v0 = vld [vmem:[#allocation2 + $0x10] sm:$0xff]  ;;  %v26_v1 = vld [vmem:[#allocation2] sm:$0xff]  ;;  %s183_s24 = smov [#allocation5]  }
  0x14   :  { %v216_v2 = vld [vmem:[#allocation2 + $0x18] sm:$0xff]  ;;  %v37_v3 = vsel %vm30_vm0, %v214_v0, 0.0  ;;  %v31_v4 = vsel %vm30_vm0, %v26_v1, 0.0  ;;  %v27_v5 = vld [vmem:[#allocation2 + $0x8] sm:$0xff]  ;;  %v43_v9 = vmul.f32 %v26_v1, %v26_v1  ;;  %v45_v13 = vmul.f32 %v214_v0, %v214_v0  ;;  %v119_v45 = vld [vmem:[%s257_s1] ss:$0 sm:$0xff] }
  0x15   :  { %38 = vadd.xlane.f32.xlu1 %v37_v3  ;;  %32 = vadd.xlane.f32.xlu0 %v31_v4  ;;  %v40_v6 = vsel %vm30_vm0, %v216_v2, 0.0  ;;  %v34_v7 = vsel %vm30_vm0, %v27_v5, 0.0  ;;  %v44_v8 = vmul.f32 %v27_v5, %v27_v5  ;;  %v46_v12 = vmul.f32 %v216_v2, %v216_v2  ;;  %s107_s25 = sshll.u32 %s183_s24, 4  ;;  %s108_s25 = int_to_ptr.vmem [resolvable:$true] %s107_s25 }
  0x16   :  { %v47_v11 = vsel %vm30_vm0, %v43_v9, 0.0  ;;  %v53_v15 = vsel %vm30_vm0, %v45_v13, 0.0  ;;  %s154_s1 = scalar_lea.vmem %s108_s25, 512  ;;  %p159_p9 = scmp.lt.s32.totalorder %s108_s25, %s108_s25 }
  0x17   :  { %v50_v10 = vsel %vm30_vm0, %v44_v8, 0.0  ;;  %v56_v14 = vsel %vm30_vm0, %v46_v12, 0.0  ;;  %p155_p8 = scmp.ne.s32.totalorder %s108_s25, %s154_s1  ;;  %p160_p10 = scmp.lt.s32.totalorder %s154_s1, %s154_s1 }
  0x19   :  { %41 = vadd.xlane.f32.xlu1 %v40_v6  ;;  %35 = vadd.xlane.f32.xlu0 %v34_v7  ;;  %p161_p11 = por %p160_p10, %p159_p9 }
  0x1b   :  { %p162_p12 = pnand %p161_p11, %p155_p8 }
  0x1d   :  { %51 = vadd.xlane.f32.xlu1 %v50_v10  ;;  %48 = vadd.xlane.f32.xlu0 %v47_v11 }
  0x21   :  { %57 = vadd.xlane.f32.xlu1 %v56_v14  ;;  %54 = vadd.xlane.f32.xlu0 %v53_v15 }
  0xa2   :  { %v39_v16 = vpop.xlane.xlu1 %38  ;;  %v33_v17 = vpop.xlane.xlu0 %32 }
  0xa3   :  { %v59_v20 = vmul.f32 0.03125, %v33_v17  ;;  %v61_v22 = vmul.f32 0.03125, %v39_v16 }
  0xa5   :  { %v67_v26 = vmul.f32 %v59_v20, %v59_v20  ;;  %v69_v32 = vmul.f32 %v61_v22, %v61_v22 }
  0xa6   :  { %v42_v18 = vpop.xlane.xlu1 %41  ;;  %v36_v19 = vpop.xlane.xlu0 %35 }
  0xa7   :  { %v60_v21 = vmul.f32 0.03125, %v36_v19  ;;  %v62_v23 = vmul.f32 0.03125, %v42_v18 }
  0xa9   :  { %v68_v27 = vmul.f32 %v60_v21, %v60_v21  ;;  %v70_v33 = vmul.f32 %v62_v23, %v62_v23 }
  0xaa   :  { %v52_v24 = vpop.xlane.xlu1 %51  ;;  %v49_v25 = vpop.xlane.xlu0 %48 }
  0xab   :  { %v64_v28 = vmul.f32 0.03125, %v52_v24  ;;  %v63_v29 = vmul.f32 0.03125, %v49_v25 }
  0xad   :  { %v72_v30 = vsub.f32 %v64_v28, %v68_v27  ;;  %v71_v31 = vsub.f32 %v63_v29, %v67_v26 }
  0xae   :  { %v58_v34 = vpop.xlane.xlu1 %57  ;;  %v55_v35 = vpop.xlane.xlu0 %54 }
  0xaf   :  { %v76_v36 = vadd.f32 1e-05, %v72_v30  ;;  %v75_v37 = vadd.f32 1e-05, %v71_v31  ;;  %v66_v38 = vmul.f32 0.03125, %v58_v34  ;;  %v65_v39 = vmul.f32 0.03125, %v55_v35 }
  0xb1   :  { %124 = vrsqrt.f32 %v76_v36  ;;  %v74_v40 = vsub.f32 %v66_v38, %v70_v33  ;;  %v73_v41 = vsub.f32 %v65_v39, %v69_v32 }
  0xb2   :  { %126 = vrsqrt.f32 %v75_v37 }
  0xb3   :  { %v78_v42 = vadd.f32 1e-05, %v74_v40  ;;  %v77_v43 = vadd.f32 1e-05, %v73_v41 }
  0xb5   :  { %128 = vrsqrt.f32 %v78_v42 }
  0xb6   :  { %130 = vrsqrt.f32 %v77_v43 }
  0xbb   :  { %v125_v44 = vpop.eup %124 }
  0xbc   :  { %v127_v46 = vpop.eup %126  ;;  %v85_v47 = vmul.f32 %v125_v44, %v27_v5 }
  0xbd   :  { %v84_v48 = vmul.f32 %v127_v46, %v26_v1 }
  0xbe   :  { %v95_v49 = vmul.f32 %v119_v45, %v85_v47 }
  0xbf   :  { %v129_v50 = vpop.eup %128  ;;  %v94_v51 = vmul.f32 %v119_v45, %v84_v48 }
  0xc0   :  { %v131_v52 = vpop.eup %130  ;;  %v87_v53 = vmul.f32 %v129_v50, %v216_v2  ;;  %99 = vst.msk [vmem:[#allocation5 + $0x8] sm:$0xff] %vm30_vm0, %v95_v49 }
  0xc1   :  { %v86_v54 = vmul.f32 %v131_v52, %v214_v0  ;;  %98 = vst.msk [vmem:[#allocation5] sm:$0xff] %vm30_vm0, %v94_v51 }
  0xc2   :  { %v97_v55 = vmul.f32 %v119_v45, %v87_v53 }
  0xc3   :  { %v96_v56 = vmul.f32 %v119_v45, %v86_v54 }
  0xc4   :  { %101 = vst.msk [vmem:[#allocation5 + $0x18] sm:$0xff] %vm30_vm0, %v97_v55 }
  0xc5   :  { %100 = vst.msk [vmem:[#allocation5 + $0x10] sm:$0xff] %vm30_vm0, %v96_v56 }
  0xc6   :  { %165 = shalt.err (!%p162_p12)
}
  0xc7   :  { %s166_s28 = scalar_lea.hbm %s258_s2, 512 }
  0xc8   :  { %p167_p13 = scmp.ne.s32.totalorder %s258_s2, %s166_s28  ;;  %p170_p0 = scmp.lt.u32.totalorder %s166_s28, %s258_s2 }
  0xca   :  { %p172_p1 = pnand %p170_p0, %p167_p13 }
  0xcc   :  { %175 = shalt.err (!%p172_p1)
}
  0xcd   :  { %113 = dma.vmem_to_hbm [thread:$0]  %s108_s25, 512, %s258_s2, [#allocation4], %s181_s19, %s181_s19, %s182_s20  }
  0xce   :  { %178 = dma.done.wait [#allocation4], 512  }
  0xcf   :  { %179 = vsyncadd [#allocation4], 4294966784 }
  0xd0   :  { %117 = vsyncpa [#allocation3], 1 }
  0xd1   :  { %118 = vsyncpa [#allocation4], 1 }

</bundles_post_ra>
